<compile_context>
chip_gen: v7x
topology: tpu7x:2x2x1
jax: 0.10.0
libtpu: 0.0.40
codegen_flags: <defaults>
</compile_context>

<pallas_src>
import jax
import jax.numpy as jnp
from jax.experimental import pallas as pl
from jax.experimental.pallas import tpu as pltpu

LANE = 128


def _mlp_kernel(x_ref, w1_ref, b1_ref, w2_ref, w3_ref, o_ref):
    x = x_ref[...]                      # (1, TN)   batch on lanes
    w1 = w1_ref[...]                    # (21, 1)   row 20 is 0
    b1 = b1_ref[...]                    # (21, 1)   row 20 is 1
    w2 = w2_ref[...]                    # (21, 21)  [w2 | b2] + pass-through row
    w3 = w3_ref[...]                    # (1, 21)   [w3 | b3]

    # Layer 1: contraction dim K=1 -> VPU outer product + bias + ReLU.
    # Row 20 becomes ReLU(0*x + 1) = 1, i.e. the folded-bias "ones" feature.
    h1 = jnp.maximum(w1 * x + b1, 0.0)                              # (21, TN)

    # Layer 2 (bias folded): MXU.
    h2 = jnp.maximum(
        jnp.dot(w2, h1, preferred_element_type=jnp.float32), 0.0)   # (21, TN)

    # Layer 3 (bias folded): second tiny MXU dot instead of VPU/XLU reduce.
    y = jnp.dot(w3, h2, preferred_element_type=jnp.float32)         # (1, TN)

    o_ref[...] = y.astype(o_ref.dtype)


def augment_params(params):
    """Fold biases into augmented 21-wide weights (do this once, not per call).

    PyTorch-convention input:
      w1 (20,1) b1 (20,)   w2 (20,20) b2 (20,)   w3 (1,20) b3 (1,)
    """
    w1, b1 = params["w1"], params["b1"]
    w2, b2 = params["w2"], params["b2"]
    w3, b3 = params["w3"], params["b3"]

    w1a = jnp.concatenate([w1, jnp.zeros((1, 1), w1.dtype)], axis=0)      # (21,1)
    b1a = jnp.concatenate([b1.reshape(20, 1),
                           jnp.ones((1, 1), b1.dtype)], axis=0)           # (21,1)

    top = jnp.concatenate([w2, b2.reshape(20, 1)], axis=1)                # (20,21)
    passthrough = jnp.zeros((1, 21), w2.dtype).at[0, 20].set(1.0)         # keeps the ones row
    w2a = jnp.concatenate([top, passthrough], axis=0)                     # (21,21)

    w3a = jnp.concatenate([w3, b3.reshape(1, 1)], axis=1)                 # (1,21)

    return {"w1a": w1a, "b1a": b1a, "w2a": w2a, "w3a": w3a}


def overkill_forward(x, aug, *, max_tn=32768):
    """x: (N, 1) float32.  aug: output of augment_params()."""
    N, Din = x.shape
    assert Din == 1

    # Pad batch only to a multiple of 128 lanes, then pick the grid so the
    # extra pad from tiling is at most steps*128 lanes (never a whole tile).
    padded128 = max(pl.cdiv(N, LANE), 1) * LANE
    steps = pl.cdiv(padded128, max_tn)
    tn = pl.cdiv(padded128 // LANE, steps) * LANE
    padded = steps * tn

    xt = jnp.pad(x.reshape(1, N), ((0, 0), (0, padded - N)))

    resident = lambda arr: pl.BlockSpec(arr.shape, lambda i: (0, 0))

    out_t = pl.pallas_call(
        _mlp_kernel,
        out_shape=jax.ShapeDtypeStruct((1, padded), x.dtype),
        grid_spec=pl.GridSpec(
            grid=(steps,),
            in_specs=[
                pl.BlockSpec((1, tn), lambda i: (0, i)),   # x tile over lanes
                resident(aug["w1a"]),
                resident(aug["b1a"]),
                resident(aug["w2a"]),
                resident(aug["w3a"]),
            ],
            out_specs=pl.BlockSpec((1, tn), lambda i: (0, i)),
        ),
        compiler_params=pltpu.CompilerParams(
            dimension_semantics=("parallel",),
            vmem_limit_bytes=32 * 1024 * 1024,
        ),
    )(xt, aug["w1a"], aug["b1a"], aug["w2a"], aug["w3a"])

    return out_t[:, :N].reshape(N, 1)


def init_params(key):
    """PyTorch Linear default init: U(-1/sqrt(fan_in), +1/sqrt(fan_in)).
    Stored in PyTorch convention: w (out, in), b (out,)."""
    params = {}
    dims = [(1, 20), (20, 20), (20, 1)]          # (fan_in, fan_out)
    for idx, (fan_in, fan_out) in enumerate(dims, start=1):
        key, kw, kb = jax.random.split(key, 3)
        bound = 1.0 / (fan_in ** 0.5)
        params[f"w{idx}"] = jax.random.uniform(
            kw, (fan_out, fan_in), jnp.float32, -bound, bound)
        params[f"b{idx}"] = jax.random.uniform(
            kb, (fan_out,), jnp.float32, -bound, bound)
    return params


def _reference(x, p):
    """Pure-JAX reference in the original (N, features) orientation."""
    h1 = jnp.maximum(x @ p["w1"].T + p["b1"], 0.0)    # (N, 20)
    h2 = jnp.maximum(h1 @ p["w2"].T + p["b2"], 0.0)   # (N, 20)
    return h2 @ p["w3"].T + p["b3"]                   # (N, 1)


if __name__ == "__main__":
    key = jax.random.PRNGKey(0)
    key, kx = jax.random.split(key)
    N = 64                                     # batch of scalar samples
    x = jax.random.normal(kx, (N, 1), jnp.float32)

    params = init_params(key)
    aug = augment_params(params)               # one-time bias folding

    out = overkill_forward(x, aug)
    out = jax.block_until_ready(out)

    ref = _reference(x, params)
    assert out.shape == (N, 1)
    assert jnp.allclose(out, ref, atol=1e-5, rtol=1e-5)
    print("KERNEL_OK")
</pallas_src>

<mosaic_0001>
module attributes {stable_mosaic.version = 11 : i64} {
  func.func @_mlp_kernel(%arg0: i32, %arg1: memref<1x128xf32, #tpu.memory_space<vmem>>, %arg2: memref<21x1xf32, #tpu.memory_space<vmem>>, %arg3: memref<21x1xf32, #tpu.memory_space<vmem>>, %arg4: memref<21x21xf32, #tpu.memory_space<vmem>>, %arg5: memref<1x21xf32, #tpu.memory_space<vmem>>, %arg6: memref<1x128xf32, #tpu.memory_space<vmem>>) attributes {dimension_semantics = [#tpu.dimension_semantics<parallel>], iteration_bounds = array<i64: 1>, scalar_prefetch = 0 : i64, scratch_operands = 0 : i64, tpu.core_type = #tpu.core_type<tc>, window_params = [{transform_indices = @transform_0, window_bounds = array<i64: 1, 128>}, {pipeline_mode = #tpu.pipeline_mode<synchronous>, transform_indices = @transform_1, window_bounds = array<i64: 21, 1>}, {pipeline_mode = #tpu.pipeline_mode<synchronous>, transform_indices = @transform_2, window_bounds = array<i64: 21, 1>}, {pipeline_mode = #tpu.pipeline_mode<synchronous>, transform_indices = @transform_3, window_bounds = array<i64: 21, 21>}, {pipeline_mode = #tpu.pipeline_mode<synchronous>, transform_indices = @transform_4, window_bounds = array<i64: 1, 21>}, {transform_indices = @transform_5, window_bounds = array<i64: 1, 128>}]} {
    %c0 = arith.constant 0 : index
    %c0_0 = arith.constant 0 : index
    %0 = vector.load %arg1[%c0, %c0_0] : memref<1x128xf32, #tpu.memory_space<vmem>>, vector<1x128xf32>
    %c0_1 = arith.constant 0 : index
    %c0_2 = arith.constant 0 : index
    %1 = vector.load %arg2[%c0_1, %c0_2] : memref<21x1xf32, #tpu.memory_space<vmem>>, vector<21x1xf32>
    %c0_3 = arith.constant 0 : index
    %c0_4 = arith.constant 0 : index
    %2 = vector.load %arg3[%c0_3, %c0_4] : memref<21x1xf32, #tpu.memory_space<vmem>>, vector<21x1xf32>
    %c0_5 = arith.constant 0 : index
    %c0_6 = arith.constant 0 : index
    %3 = vector.load %arg4[%c0_5, %c0_6] : memref<21x21xf32, #tpu.memory_space<vmem>>, vector<21x21xf32>
    %c0_7 = arith.constant 0 : index
    %c0_8 = arith.constant 0 : index
    %4 = vector.load %arg5[%c0_7, %c0_8] : memref<1x21xf32, #tpu.memory_space<vmem>>, vector<1x21xf32>
    %5 = vector.broadcast %1 : vector<21x1xf32> to vector<21x128xf32>
    %6 = vector.broadcast %0 : vector<1x128xf32> to vector<21x128xf32>
    %7 = arith.mulf %5, %6 : vector<21x128xf32>
    %8 = vector.broadcast %2 : vector<21x1xf32> to vector<21x128xf32>
    %9 = arith.addf %7, %8 : vector<21x128xf32>
    %cst = arith.constant 0.000000e+00 : f32
    %10 = vector.broadcast %cst : f32 to vector<21x128xf32>
    %11 = arith.maximumf %9, %10 : vector<21x128xf32>
    %cst_9 = arith.constant dense<0.000000e+00> : vector<21x128xf32>
    %12 = tpu.matmul %3, %11, %cst_9 {dimension_numbers = #tpu.dot_dimension_numbers<[1], [0], [0], [1], [0, 0, 1, 1], [], []>} : vector<21x21xf32>, vector<21x128xf32>, vector<21x128xf32> -> vector<21x128xf32>
    %cst_10 = arith.constant 0.000000e+00 : f32
    %13 = vector.broadcast %cst_10 : f32 to vector<21x128xf32>
    %14 = arith.maximumf %12, %13 : vector<21x128xf32>
    %cst_11 = arith.constant dense<0.000000e+00> : vector<1x128xf32>
    %15 = tpu.matmul %4, %14, %cst_11 {dimension_numbers = #tpu.dot_dimension_numbers<[1], [0], [0], [1], [0, 0, 1, 1], [], []>} : vector<1x21xf32>, vector<21x128xf32>, vector<1x128xf32> -> vector<1x128xf32>
    %c0_12 = arith.constant 0 : index
    %c0_13 = arith.constant 0 : index
    %16 = vector.load %arg6[%c0_12, %c0_13] : memref<1x128xf32, #tpu.memory_space<vmem>>, vector<1x128xf32>
    tpu.vector_store %arg6[%c0_12, %c0_13], %15 {strides = array<i32>} : memref<1x128xf32, #tpu.memory_space<vmem>>, vector<1x128xf32>,
    return
  }
  func.func @transform_0(%arg0: i32) -> (i32, i32) {
    %c0_i32 = arith.constant 0 : i32
    %c0_i32_0 = arith.constant 0 : i32
    return %c0_i32, %arg0 : i32, i32
  }
  func.func @transform_1(%arg0: i32) -> (i32, i32) {
    %c0_i32 = arith.constant 0 : i32
    %c0_i32_0 = arith.constant 0 : i32
    %c0_i32_1 = arith.constant 0 : i32
    return %c0_i32, %c0_i32_0 : i32, i32
  }
  func.func @transform_2(%arg0: i32) -> (i32, i32) {
    %c0_i32 = arith.constant 0 : i32
    %c0_i32_0 = arith.constant 0 : i32
    %c0_i32_1 = arith.constant 0 : i32
    return %c0_i32, %c0_i32_0 : i32, i32
  }
  func.func @transform_3(%arg0: i32) -> (i32, i32) {
    %c0_i32 = arith.constant 0 : i32
    %c0_i32_0 = arith.constant 0 : i32
    %c0_i32_1 = arith.constant 0 : i32
    return %c0_i32, %c0_i32_0 : i32, i32
  }
  func.func @transform_4(%arg0: i32) -> (i32, i32) {
    %c0_i32 = arith.constant 0 : i32
    %c0_i32_0 = arith.constant 0 : i32
    %c0_i32_1 = arith.constant 0 : i32
    return %c0_i32, %c0_i32_0 : i32, i32
  }
  func.func @transform_5(%arg0: i32) -> (i32, i32) {
    %c0_i32 = arith.constant 0 : i32
    %c0_i32_0 = arith.constant 0 : i32
    return %c0_i32, %arg0 : i32, i32
  }
}

</mosaic_0001>

<bundles_post_ra>
// kernel: tpu_custom_call.1
= control target key start
LH: loop header
LB: loop body
LE: loop exit
PB: predicated region body
PF: predicated region fallthrough
CT: control target
= control target key end

     0   :  { %v343_v2 = vmov 0   ;;  %s433_s0 = inlined_call_operand.vmem [shape: f32[1,128], index: 0, kind: input, shape index: {}]   ;;  %s434_s1 = inlined_call_operand.vmem [shape: f32[21,1], index: 1, kind: input, shape index: {}]   ;;  %s435_s2 = inlined_call_operand.vmem [shape: f32[21,1], index: 2, kind: input, shape index: {}]   ;;  %s436_s3 = inlined_call_operand.vmem [shape: f32[21,21], index: 3, kind: input, shape index: {}]   ;;  %s437_s4 = inlined_call_operand.vmem [shape: f32[1,21], index: 4, kind: input, shape index: {}]   ;;  %s438_s5 = inlined_call_operand.hbm [shape: f32[1,128], index: 5, kind: output, shape index: {}]  }
   0x1   :  { %v25_v0 = vld [vmem:[%s435_s2] sm:$0xff]  ;;  %318 = vset.pattern.permute.xlu1 %v343_v2  ;;  %317 = vset.pattern.permute.xlu0 %v343_v2 }
   0x2   :  { %v22_v1 = vld [vmem:[%s434_s1] sm:$0xff]  ;;  %58 = vperm.xlu1 %318, %v25_v0  }
   0x3   :  { %34 = vperm.xlu0 %317, %v22_v1  }
   0x4   :  { %10 = vsyncpa [#allocation3], 0  ;;  %v26_v3 = vld [vmem:[%s435_s2 + $0x8] sm:$0xff]  ;;  %v27_v5 = vld [vmem:[%s435_s2 + $0x10] sm:$0x1f]  ;;  %v344_v7 = vmov 0.0|0.0  }
   0x5   :  { %v23_v4 = vld [vmem:[%s434_s1 + $0x8] sm:$0xff]  ;;  %v24_v6 = vld [vmem:[%s434_s1 + $0x10] sm:$0x1f]  ;;  %306 = vmatprep.subr.bf16.mxu0 %v344_v7  ;;  %309 = vmatprep.subr.bf16.mxu1 %v344_v7  ;;  %vm345_vm0 = vmmov 0   ;;  %v346_v8 = vmov 0.0   ;;  %vm87_vm1 = vcmask 1044480  }
   0x6   :  { %63 = vperm.xlu1 %318, %v26_v3   ;;  %288 = vmatprep.mubr.msk.f32.mxu0 %vm345_vm0, %v346_v8  ;;  %v265_v9 = vld [vmem:[%s433_s0] ss:$0 sm:$0xff]  ;;  %vm77_vm2 = vcmask 171008   ;;  %v29_v27 = vld [vmem:[%s436_s3 + $0x8] sm:$0xff]  ;;  %v30_v28 = vld [vmem:[%s436_s3 + $0x10] sm:$0x1f] }
   0x7   :  { %39 = vperm.xlu0 %317, %v23_v4   ;;  %303 = vmatprep.mubr.msk.f32.mxu1 %vm345_vm0, %v346_v8  ;;  %v28_v26 = vld [vmem:[%s436_s3] sm:$0xff]  ;;  %s347_s3 = smov [#allocation2]  }
   0x8   :  { %v31_v39 = vld [vmem:[%s437_s4] sm:$0x1]  ;;  %s257_s12 = sshll.u32 %s347_s3, 4  ;;  %s258_s12 = int_to_ptr.vmem [resolvable:$true] %s257_s12 }
   0x9   :  { %s319_s13 = scalar_lea.vmem %s258_s12, 16  ;;  %s323_s14 = scalar_lea.vmem %s258_s12, 32 }
   0xa   :  { %68 = vperm.xlu1 %318, %v27_v5   ;;  %p320_p0 = scmp.ne.s32.totalorder %s258_s12, %s319_s13  ;;  %p324_p1 = scmp.lt.s32.totalorder %s258_s12, %s258_s12 }
   0xb   :  { %44 = vperm.xlu0 %317, %v24_v6   ;;  %p325_p2 = scmp.lt.s32.totalorder %s323_s14, %s319_s13 }
   0xd   :  { %p326_p3 = por %p325_p2, %p324_p1 }
   0xf   :  { %p327_p4 = pnand %p326_p3, %p320_p0 }
  0x81   :  { %v59_v10 = vpop.permute.xlu1 %58 }
  0x82   :  { %v35_v11 = vpop.permute.xlu0 %34 }
  0x83   :  { %v53_v12 = vmul.f32 %v265_v9, %v35_v11 }
  0x85   :  { %v64_v13 = vpop.permute.xlu1 %63  ;;  %v71_v15 = vadd.f32 %v59_v10, %v53_v12 }
  0x86   :  { %v40_v14 = vpop.permute.xlu0 %39 }
  0x87   :  { %v54_v16 = vmul.f32 %v265_v9, %v40_v14  ;;  %v74_v19 = vmax.f32 %v71_v15, 0.0 }
  0x89   :  { %v72_v17 = vadd.f32 %v64_v13, %v54_v16  ;;  %v69_v22 = vpop.permute.xlu1 %68 }
  0x8a   :  { %v45_v18 = vpop.permute.xlu0 %44 }
  0x8b   :  { %v75_v20 = vmax.f32 %v72_v17, 0.0  ;;  %v55_v21 = vmul.f32 %v265_v9, %v45_v18 }
  0x8d   :  { %v73_v23 = vadd.f32 %v69_v22, %v55_v21  ;;  %v307_v24 = vpack.c.bf16 %v75_v20, %v74_v19 }
  0x8f   :  { %308 = vmatpush3.bf16.msra.mxu0 %v307_v24  ;;  %v76_v25 = vmax.f32 %v73_v23, 0.0 }
  0x90   :  { %286 = vmatprep.subr.mxu0 %v346_v8 }
  0x93   :  { %287 = vmatpush3.msk.msra.mxu0 %vm87_vm1, %v76_v25 }
  0x94   :  { %289 = vmatmul.mubr.msk.f32.vlgmr.msra.gmra.mrb[0].mxu0 %vm77_vm2, %v28_v26 }
  0x95   :  { %291 = vmatprep.mubr.msk.f32.mxu0 %vm345_vm0, %v346_v8 }
  0x98   :  { %292 = vmatmul.mubr.msk.f32.gmra.mrb[2].mxu0 %vm77_vm2, %v29_v27 }
  0x99   :  { %294 = vmatprep.mubr.msk.f32.mxu0 %vm345_vm0, %v346_v8 }
  0x9c   :  { %295 = vmatmul.mubr.msk.f32.gmra.mrb[4].mxu0 %vm77_vm2, %v30_v28 }
 0x167   :  { %v157_v29 = vpop.f32.mrb[0].mxu0 }
 0x168   :  { %v290_v30 = vpop.f32.mrb[1].mxu0  ;;  %v171_v32 = vmax.f32 %v157_v29, 0.0 }
 0x16b   :  { %v162_v31 = vpop.f32.mrb[2].mxu0 }
 0x16c   :  { %v172_v33 = vmax.f32 %v162_v31, 0.0  ;;  %v293_v34 = vpop.f32.mrb[3].mxu0 }
 0x16e   :  { %v310_v35 = vpack.c.bf16 %v172_v33, %v171_v32 }
 0x16f   :  { %v167_v36 = vpop.f32.mrb[4].mxu0 }
 0x170   :  { %v173_v37 = vmax.f32 %v167_v36, 0.0  ;;  %311 = vmatpush3.bf16.msra.mxu1 %v310_v35  ;;  %v296_v38 = vpop.f32.mrb[5].mxu0 }
 0x171   :  { %301 = vmatprep.subr.mxu1 %v346_v8 }
 0x174   :  { %302 = vmatpush3.msk.msra.mxu1 %vm87_vm1, %v173_v37 }
 0x175   :  { %304 = vmatmul.mubr.msk.f32.vlgmr.msra.gmra.mrb[0].mxu1 %vm77_vm2, %v31_v39 }
 0x248   :  { %v246_v40 = vpop.f32.mrb[0].mxu1 }
 0x249   :  { %250 = vst [vmem:[#allocation2] sm:$0x1] %v246_v40  ;;  %v305_v41 = vpop.f32.mrb[1].mxu1 }
 0x24a   :  { %330 = shalt.err (!%p327_p4)
}
 0x24b   :  { %s331_s16 = scalar_lea.hbm %s438_s5, 16 }
 0x24c   :  { %p332_p5 = scmp.ne.s32.totalorder %s438_s5, %s331_s16  ;;  %p335_p6 = scmp.lt.u32.totalorder %s331_s16, %s438_s5 }
 0x24e   :  { %p337_p7 = pnand %p335_p6, %p332_p5 }
 0x250   :  { %340 = shalt.err (!%p337_p7)
}
 0x251   :  { %260 = dma.vmem_to_hbm [thread:$0]  %s258_s12, 16, %s438_s5, [#allocation3]  }
 0x252   :  { %341 = dma.done.wait [#allocation3], 16  }
 0x253   :  { %342 = vsyncadd [#allocation3], 4294967280 }
 0x254   :  { %264 = vsyncpa [#allocation3], 1 }

</bundles_post_ra>
